<compile_context>
chip_gen: v6e
topology: v6e:2x2x1
jax: 0.10.0
libtpu: 0.0.40
codegen_flags: <defaults>
</compile_context>

<pallas_src>
import functools

import jax
import jax.numpy as jnp
from jax.experimental import pallas as pl
from jax.experimental.pallas import tpu as pltpu


def _round_up(a, b):
    return (a + b - 1) // b * b


# --------------------------------------------------------------------------- #
# Kernel
# --------------------------------------------------------------------------- #
def _club_kernel(x_ref, y_ref, yp_ref,
                 w1_ref, b1_ref, w2m_ref, b2m_ref, w2l_ref, b2l_ref,
                 out_ref, *, h_pad):
    x = x_ref[...]

    # Fused first layer: [mu-hidden | logvar-hidden], each half padded to a
    # 128-lane boundary -> f32 MXU accumulation, ReLU on the VPU.
    h = jnp.dot(x, w1_ref[...], preferred_element_type=jnp.float32) + b1_ref[...]
    h = jnp.maximum(h, 0.0).astype(w2m_ref.dtype)

    # Unfused second layer (no block-diagonal zero FLOPs); the split at h_pad
    # is lane-aligned (h_pad is a multiple of 128) so slicing is free.
    mu = jnp.dot(h[:, :h_pad], w2m_ref[...],
                 preferred_element_type=jnp.float32) + b2m_ref[...]
    lv = jnp.dot(h[:, h_pad:], w2l_ref[...],
                 preferred_element_type=jnp.float32) + b2l_ref[...]
    logvar = jnp.tanh(lv)
    inv_var = jnp.exp(-logvar)                      # EUP slot

    y = y_ref[...].astype(jnp.float32)
    yp = yp_ref[...].astype(jnp.float32)

    # positive - negative == (y - y_perm) * (2*mu - y - y_perm) * exp(-logvar)
    # Padded rows have y == y_perm == 0 -> contribute exactly 0.
    contrib = (y - yp) * (2.0 * mu - y - yp) * inv_var
    partial = jnp.sum(contrib)

    # Lane-dense writeback of this tile's partial sum (no masked sub-128 store).
    out_ref[...] = jnp.full(out_ref.shape, partial, dtype=out_ref.dtype)


# --------------------------------------------------------------------------- #
# Wrapper / tiling
# --------------------------------------------------------------------------- #
def _tpu_vmem_bytes():
    try:
        return int(pltpu.get_tpu_info().vmem_capacity_bytes)
    except Exception:
        return 64 * 1024 * 1024  # conservative (v7x per-TC)


def _choose_tile(n_aligned, row_align, target_tile):
    """Pick a row tile: sublane-aligned, >=2 tiles when possible, prefer a
    divisor of the (minimally) aligned batch so no full jnp.pad copy is needed."""
    if n_aligned >= 2 * 128:
        # Make sure the grid has at least two tiles so v7x's second TC works.
        target_tile = min(target_tile, _round_up(pl.cdiv(n_aligned, 2), 128))
    target_tile = max(row_align, _round_up(min(target_tile, n_aligned), row_align))

    units = n_aligned // row_align
    k_max = target_tile // row_align
    best = None
    for k in range(k_max, 0, -1):
        if units % k == 0:
            best = k * row_align
            break
    if best is not None and best * 8 >= target_tile:
        return best, n_aligned                      # exact divisor, no extra pad
    tile = target_tile                              # fall back: pad to a tile multiple
    return tile, _round_up(n_aligned, tile)


def club_sample_forward(x, y, y_perm, params, *, tile_n=None,
                        stream_dtype=jnp.bfloat16):
    """Pallas implementation of CLUBSample.forward (given the permuted y)."""
    n, x_dim = x.shape
    y_dim = y.shape[1]
    w1m, b1m, w2m, b2m, w1l, b1l, w2l, b2l = params
    h_dim = w1m.shape[1]
    h_pad = _round_up(h_dim, 128)                   # lane-aligned hidden split

    # ---------------- generation-aware configuration ----------------
    phys_vmem = _tpu_vmem_bytes()
    big_vmem = phys_vmem >= 96 * 1024 * 1024        # v5e / v6e (128 MiB)
    if tile_n is None:
        tile_n = 1024 if big_vmem else 512          # v7x (64 MiB) -> 512
    vmem_cap = (int(phys_vmem * 0.75) if big_vmem else 48 * 1024 * 1024)

    # ---------------- weight layout (lane-aligned fused first layer) --------
    def pad_cols(a, width):
        return jnp.pad(a, ((0, 0), (0, width - a.shape[1])))

    w1f = jnp.concatenate([pad_cols(w1m, h_pad), pad_cols(w1l, h_pad)], axis=1)
    b1f = jnp.concatenate([pad_cols(b1m, h_pad), pad_cols(b1l, h_pad)], axis=1)
    w2m_p = jnp.pad(w2m, ((0, h_pad - h_dim), (0, 0)))
    w2l_p = jnp.pad(w2l, ((0, h_pad - h_dim), (0, 0)))

    stream_dtype = jnp.dtype(stream_dtype)
    if stream_dtype != jnp.float32:
        # Halve the x AND y HBM streams; accumulation / epilogue stay f32.
        x = x.astype(stream_dtype)
        y = y.astype(stream_dtype)
        y_perm = y_perm.astype(stream_dtype)
        w1f = w1f.astype(stream_dtype)
        w2m_p = w2m_p.astype(stream_dtype)
        w2l_p = w2l_p.astype(stream_dtype)

    # ---------------- row tiling ----------------
    itemsize = stream_dtype.itemsize
    row_align = {4: 8, 2: 16, 1: 32}.get(itemsize, 8)   # sublane packing per dtype
    n_aligned = _round_up(n, row_align)
    tile, n_pad = _choose_tile(n_aligned, row_align, tile_n)
    if n_pad != n:
        x = jnp.pad(x, ((0, n_pad - n), (0, 0)))
        y = jnp.pad(y, ((0, n_pad - n), (0, 0)))
        y_perm = jnp.pad(y_perm, ((0, n_pad - n), (0, 0)))
    num_tiles = n_pad // tile

    # ---------------- VMEM budget ----------------
    tile_in_bytes = tile * x_dim * itemsize + 2 * tile * y_dim * itemsize
    weight_bytes = ((x_dim * 2 * h_pad + 2 * h_pad * y_dim) * itemsize
                    + (2 * h_pad + 2 * y_dim) * 4)
    act_bytes = tile * 2 * h_pad * (4 + itemsize) + 8 * tile * y_dim * 4
    out_bytes = 8 * 128 * 4
    vmem_needed = 2 * tile_in_bytes + 2 * weight_bytes + act_bytes + 2 * out_bytes
    vmem_limit = int(min(vmem_cap, max(16 * 1024 * 1024, 2 * vmem_needed)))

    cost = pl.CostEstimate(
        flops=int(2 * n_pad * (x_dim * 2 * h_pad + 2 * h_pad * y_dim)
                  + 8 * n_pad * y_dim),
        transcendentals=int(2 * n_pad * y_dim),
        bytes_accessed=int(n_pad * (x_dim + 2 * y_dim) * itemsize
                           + weight_bytes + num_tiles * 8 * 128 * 4),
    )

    kernel = functools.partial(_club_kernel, h_pad=h_pad)

    def make_call(single_buffer_weights):
        def wspec(shape):
            if single_buffer_weights:
                return pl.BlockSpec(shape, lambda i: (0, 0),
                                    pipeline_mode=pl.Buffered(buffer_count=1))
            return pl.BlockSpec(shape, lambda i: (0, 0))

        grid_spec = pltpu.PrefetchScalarGridSpec(
            num_scalar_prefetch=0,
            grid=(num_tiles,),
            in_specs=[
                pl.BlockSpec((tile, x_dim), lambda i: (i, 0)),   # x rows (streamed)
                pl.BlockSpec((tile, y_dim), lambda i: (i, 0)),   # y rows
                pl.BlockSpec((tile, y_dim), lambda i: (i, 0)),   # y_perm rows
                wspec((x_dim, 2 * h_pad)),                       # W1 fused (resident)
                wspec((1, 2 * h_pad)),                           # b1 fused
                wspec((h_pad, y_dim)),                           # W2 (mu)
                wspec((1, y_dim)),                               # b2 (mu)
                wspec((h_pad, y_dim)),                           # W2 (logvar)
                wspec((1, y_dim)),                               # b2 (logvar)
            ],
            out_specs=pl.BlockSpec((1, 8, 128), lambda i: (i, 0, 0)),
        )
        return pl.pallas_call(
            kernel,
            out_shape=jax.ShapeDtypeStruct((num_tiles, 8, 128), jnp.float32),
            grid_spec=grid_spec,
            compiler_params=pltpu.CompilerParams(
                dimension_semantics=("parallel",),
                vmem_limit_bytes=vmem_limit,
            ),
            cost_estimate=cost,
        )

    args = (x, y, y_perm, w1f, b1f, w2m_p, b2m, w2l_p, b2l)
    try:
        partials = make_call(True)(*args)
    except Exception:
        # Fallback in case pipeline_mode=Buffered(1) is rejected by this jax build.
        partials = make_call(False)(*args)

    # Final reduction + normalization done once, with the TRUE batch size.
    total = jnp.sum(partials[:, 0, 0])
    return total / (2.0 * n)


def club_sample_upper_bound(x, y, params, key, **kwargs):
    """Mirrors CLUBSample.forward: the random batch permutation is JAX glue."""
    perm = jax.random.permutation(key, x.shape[0])
    return club_sample_forward(x, y, y[perm], params, **kwargs)


# --------------------------------------------------------------------------- #
# Parameter init (matches nn.Linear default init layout: x @ W + b) & reference
# --------------------------------------------------------------------------- #
def init_params(key, x_dim, y_dim, hidden_size):
    h = hidden_size // 2
    ks = jax.random.split(key, 8)

    def lin(kw, kb, fan_in, fan_out):
        bound = 1.0 / jnp.sqrt(fan_in)
        w = jax.random.uniform(kw, (fan_in, fan_out), jnp.float32, -bound, bound)
        b = jax.random.uniform(kb, (1, fan_out), jnp.float32, -bound, bound)
        return w, b

    w1m, b1m = lin(ks[0], ks[1], x_dim, h)
    w2m, b2m = lin(ks[2], ks[3], h, y_dim)
    w1l, b1l = lin(ks[4], ks[5], x_dim, h)
    w2l, b2l = lin(ks[6], ks[7], h, y_dim)
    return (w1m, b1m, w2m, b2m, w1l, b1l, w2l, b2l)


def club_sample_reference(x, y, y_perm, params):
    (w1m, b1m, w2m, b2m, w1l, b1l, w2l, b2l) = params
    mu = jnp.maximum(x @ w1m + b1m, 0.0) @ w2m + b2m
    logvar = jnp.tanh(jnp.maximum(x @ w1l + b1l, 0.0) @ w2l + b2l)
    pos = -((mu - y) ** 2) / jnp.exp(logvar)
    neg = -((mu - y_perm) ** 2) / jnp.exp(logvar)
    return (pos.sum(-1) - neg.sum(-1)).mean() / 2.0


# --------------------------------------------------------------------------- #
# Demo / self-test
# --------------------------------------------------------------------------- #
if __name__ == "__main__":
    key = jax.random.PRNGKey(0)
    k_x, k_y, k_p, k_perm = jax.random.split(key, 4)

    batch, x_dim, y_dim, hidden_size = 8, 32, 16, 64

    x = jax.random.normal(k_x, (batch, x_dim), jnp.float32)
    y = jax.random.normal(k_y, (batch, y_dim), jnp.float32)
    params = init_params(k_p, x_dim, y_dim, hidden_size)

    # torch.randperm equivalent (glue, not kernel)
    perm = jax.random.permutation(k_perm, batch)
    y_perm = y[perm]

    ref = club_sample_reference(x, y, y_perm, params)

    # f32 streaming path: must match the reference tightly.
    out_f32 = jax.block_until_ready(
        club_sample_forward(x, y, y_perm, params, stream_dtype=jnp.float32))
    assert jnp.allclose(out_f32, ref, rtol=1e-5, atol=1e-5), (out_f32, ref)

    # Default (bf16-streamed) path: memory-roofline config; epilogue stays f32,
    # so it must remain close to the f32 reference.
    out_bf16 = jax.block_until_ready(club_sample_forward(x, y, y_perm, params))
    assert jnp.isfinite(out_bf16), out_bf16
    assert jnp.abs(out_bf16 - ref) < 0.1 + 0.1 * jnp.abs(ref), (out_bf16, ref)

    print("KERNEL_OK")
</pallas_src>

<mosaic_0001>
module attributes {stable_mosaic.version = 11 : i64} {
  func.func @_club_kernel(%arg0: i32, %arg1: memref<8x32xf32, #tpu.memory_space<vmem>>, %arg2: memref<8x16xf32, #tpu.memory_space<vmem>>, %arg3: memref<8x16xf32, #tpu.memory_space<vmem>>, %arg4: memref<32x256xf32, #tpu.memory_space<vmem>>, %arg5: memref<1x256xf32, #tpu.memory_space<vmem>>, %arg6: memref<128x16xf32, #tpu.memory_space<vmem>>, %arg7: memref<1x16xf32, #tpu.memory_space<vmem>>, %arg8: memref<128x16xf32, #tpu.memory_space<vmem>>, %arg9: memref<1x16xf32, #tpu.memory_space<vmem>>, %arg10: memref<1x8x128xf32, #tpu.memory_space<vmem>>) attributes {dimension_semantics = [#tpu.dimension_semantics<parallel>], iteration_bounds = array<i64: 1>, scalar_prefetch = 0 : i64, scratch_operands = 0 : i64, tpu.core_type = #tpu.core_type<tc>, window_params = [{transform_indices = @transform_0, window_bounds = array<i64: 8, 32>}, {transform_indices = @transform_1, window_bounds = array<i64: 8, 16>}, {transform_indices = @transform_2, window_bounds = array<i64: 8, 16>}, {pipeline_mode = #tpu.pipeline_mode<synchronous>, transform_indices = @transform_3, window_bounds = array<i64: 32, 256>}, {pipeline_mode = #tpu.pipeline_mode<synchronous>, transform_indices = @transform_4, window_bounds = array<i64: 1, 256>}, {pipeline_mode = #tpu.pipeline_mode<synchronous>, transform_indices = @transform_5, window_bounds = array<i64: 128, 16>}, {pipeline_mode = #tpu.pipeline_mode<synchronous>, transform_indices = @transform_6, window_bounds = array<i64: 1, 16>}, {pipeline_mode = #tpu.pipeline_mode<synchronous>, transform_indices = @transform_7, window_bounds = array<i64: 128, 16>}, {pipeline_mode = #tpu.pipeline_mode<synchronous>, transform_indices = @transform_8, window_bounds = array<i64: 1, 16>}, {transform_indices = @transform_9, window_bounds = array<i64: 1, 8, 128>}]} {
    %c0 = arith.constant 0 : index
    %c0_0 = arith.constant 0 : index
    %0 = vector.load %arg1[%c0, %c0_0] : memref<8x32xf32, #tpu.memory_space<vmem>>, vector<8x32xf32>
    %c0_1 = arith.constant 0 : index
    %c0_2 = arith.constant 0 : index
    %1 = vector.load %arg4[%c0_1, %c0_2] : memref<32x256xf32, #tpu.memory_space<vmem>>, vector<32x256xf32>
    %cst = arith.constant dense<0.000000e+00> : vector<8x256xf32>
    %2 = tpu.matmul %0, %1, %cst {dimension_numbers = #tpu.dot_dimension_numbers<[1], [0], [0], [1], [0, 0, 1, 1], [], []>} : vector<8x32xf32>, vector<32x256xf32>, vector<8x256xf32> -> vector<8x256xf32>
    %c0_3 = arith.constant 0 : index
    %c0_4 = arith.constant 0 : index
    %3 = vector.load %arg5[%c0_3, %c0_4] : memref<1x256xf32, #tpu.memory_space<vmem>>, vector<1x256xf32>
    %4 = vector.broadcast %3 : vector<1x256xf32> to vector<8x256xf32>
    %5 = arith.addf %2, %4 : vector<8x256xf32>
    %cst_5 = arith.constant 0.000000e+00 : f32
    %6 = vector.broadcast %cst_5 : f32 to vector<8x256xf32>
    %7 = arith.maximumf %5, %6 : vector<8x256xf32>
    %8 = vector.extract_strided_slice %7 {offsets = [0, 0], sizes = [8, 128], strides = [1, 1]} : vector<8x256xf32> to vector<8x128xf32>
    %c0_6 = arith.constant 0 : index
    %c0_7 = arith.constant 0 : index
    %9 = vector.load %arg6[%c0_6, %c0_7] : memref<128x16xf32, #tpu.memory_space<vmem>>, vector<128x16xf32>
    %cst_8 = arith.constant dense<0.000000e+00> : vector<8x16xf32>
    %10 = tpu.matmul %8, %9, %cst_8 {dimension_numbers = #tpu.dot_dimension_numbers<[1], [0], [0], [1], [0, 0, 1, 1], [], []>} : vector<8x128xf32>, vector<128x16xf32>, vector<8x16xf32> -> vector<8x16xf32>
    %c0_9 = arith.constant 0 : index
    %c0_10 = arith.constant 0 : index
    %11 = vector.load %arg7[%c0_9, %c0_10] : memref<1x16xf32, #tpu.memory_space<vmem>>, vector<1x16xf32>
    %12 = vector.broadcast %11 : vector<1x16xf32> to vector<8x16xf32>
    %13 = arith.addf %10, %12 : vector<8x16xf32>
    %14 = vector.extract_strided_slice %7 {offsets = [0, 128], sizes = [8, 128], strides = [1, 1]} : vector<8x256xf32> to vector<8x128xf32>
    %c0_11 = arith.constant 0 : index
    %c0_12 = arith.constant 0 : index
    %15 = vector.load %arg8[%c0_11, %c0_12] : memref<128x16xf32, #tpu.memory_space<vmem>>, vector<128x16xf32>
    %cst_13 = arith.constant dense<0.000000e+00> : vector<8x16xf32>
    %16 = tpu.matmul %14, %15, %cst_13 {dimension_numbers = #tpu.dot_dimension_numbers<[1], [0], [0], [1], [0, 0, 1, 1], [], []>} : vector<8x128xf32>, vector<128x16xf32>, vector<8x16xf32> -> vector<8x16xf32>
    %c0_14 = arith.constant 0 : index
    %c0_15 = arith.constant 0 : index
    %17 = vector.load %arg9[%c0_14, %c0_15] : memref<1x16xf32, #tpu.memory_space<vmem>>, vector<1x16xf32>
    %18 = vector.broadcast %17 : vector<1x16xf32> to vector<8x16xf32>
    %19 = arith.addf %16, %18 : vector<8x16xf32>
    %20 = math.tanh %19 : vector<8x16xf32>
    %cst_16 = arith.constant 0.000000e+00 : f32
    %21 = vector.broadcast %cst_16 : f32 to vector<8x16xf32>
    %22 = arith.subf %21, %20 : vector<8x16xf32>
    %23 = math.exp %22 : vector<8x16xf32>
    %c0_17 = arith.constant 0 : index
    %c0_18 = arith.constant 0 : index
    %24 = vector.load %arg2[%c0_17, %c0_18] : memref<8x16xf32, #tpu.memory_space<vmem>>, vector<8x16xf32>
    %c0_19 = arith.constant 0 : index
    %c0_20 = arith.constant 0 : index
    %25 = vector.load %arg3[%c0_19, %c0_20] : memref<8x16xf32, #tpu.memory_space<vmem>>, vector<8x16xf32>
    %26 = arith.subf %24, %25 : vector<8x16xf32>
    %cst_21 = arith.constant 2.000000e+00 : f32
    %27 = vector.broadcast %cst_21 : f32 to vector<8x16xf32>
    %28 = arith.mulf %27, %13 : vector<8x16xf32>
    %29 = arith.subf %28, %24 : vector<8x16xf32>
    %30 = arith.subf %29, %25 : vector<8x16xf32>
    %31 = arith.mulf %26, %30 : vector<8x16xf32>
    %32 = arith.mulf %31, %23 : vector<8x16xf32>
    %33 = vector.shape_cast %32 : vector<8x16xf32> to vector<1x8x16xf32>
    %cst_22 = arith.constant dense<0.000000e+00> : vector<1xf32>
    %34 = vector.multi_reduction <add>, %33, %cst_22 [1, 2] : vector<1x8x16xf32> to vector<1xf32>
    %35 = vector.shape_cast %34 : vector<1xf32> to vector<1x1x1xf32>
    %36 = vector.extract %35[0, 0, 0] : f32 from vector<1x1x1xf32>
    %37 = vector.broadcast %36 : f32 to vector<1x8x128xf32>
    %c0_23 = arith.constant 0 : index
    %c0_24 = arith.constant 0 : index
    %c0_25 = arith.constant 0 : index
    %38 = vector.load %arg10[%c0_23, %c0_24, %c0_25] : memref<1x8x128xf32, #tpu.memory_space<vmem>>, vector<1x8x128xf32>
    tpu.vector_store %arg10[%c0_23, %c0_24, %c0_25], %37 {strides = array<i32>} : memref<1x8x128xf32, #tpu.memory_space<vmem>>, vector<1x8x128xf32>,
    return
  }
  func.func @transform_0(%arg0: i32) -> (i32, i32) {
    %c0_i32 = arith.constant 0 : i32
    %c0_i32_0 = arith.constant 0 : i32
    return %arg0, %c0_i32 : i32, i32
  }
  func.func @transform_1(%arg0: i32) -> (i32, i32) {
    %c0_i32 = arith.constant 0 : i32
    %c0_i32_0 = arith.constant 0 : i32
    return %arg0, %c0_i32 : i32, i32
  }
  func.func @transform_2(%arg0: i32) -> (i32, i32) {
    %c0_i32 = arith.constant 0 : i32
    %c0_i32_0 = arith.constant 0 : i32
    return %arg0, %c0_i32 : i32, i32
  }
  func.func @transform_3(%arg0: i32) -> (i32, i32) {
    %c0_i32 = arith.constant 0 : i32
    %c0_i32_0 = arith.constant 0 : i32
    %c0_i32_1 = arith.constant 0 : i32
    return %c0_i32, %c0_i32_0 : i32, i32
  }
  func.func @transform_4(%arg0: i32) -> (i32, i32) {
    %c0_i32 = arith.constant 0 : i32
    %c0_i32_0 = arith.constant 0 : i32
    %c0_i32_1 = arith.constant 0 : i32
    return %c0_i32, %c0_i32_0 : i32, i32
  }
  func.func @transform_5(%arg0: i32) -> (i32, i32) {
    %c0_i32 = arith.constant 0 : i32
    %c0_i32_0 = arith.constant 0 : i32
    %c0_i32_1 = arith.constant 0 : i32
    return %c0_i32, %c0_i32_0 : i32, i32
  }
  func.func @transform_6(%arg0: i32) -> (i32, i32) {
    %c0_i32 = arith.constant 0 : i32
    %c0_i32_0 = arith.constant 0 : i32
    %c0_i32_1 = arith.constant 0 : i32
    return %c0_i32, %c0_i32_0 : i32, i32
  }
  func.func @transform_7(%arg0: i32) -> (i32, i32) {
    %c0_i32 = arith.constant 0 : i32
    %c0_i32_0 = arith.constant 0 : i32
    %c0_i32_1 = arith.constant 0 : i32
    return %c0_i32, %c0_i32_0 : i32, i32
  }
  func.func @transform_8(%arg0: i32) -> (i32, i32) {
    %c0_i32 = arith.constant 0 : i32
    %c0_i32_0 = arith.constant 0 : i32
    %c0_i32_1 = arith.constant 0 : i32
    return %c0_i32, %c0_i32_0 : i32, i32
  }
  func.func @transform_9(%arg0: i32) -> (i32, i32, i32) {
    %c0_i32 = arith.constant 0 : i32
    %c0_i32_0 = arith.constant 0 : i32
    %c0_i32_1 = arith.constant 0 : i32
    return %arg0, %c0_i32, %c0_i32_0 : i32, i32, i32
  }
}

module attributes {stable_mosaic.version = 11 : i64} {
  func.func @_club_kernel(%arg0: i32, %arg1: memref<8x32xf32, #tpu.memory_space<vmem>>, %arg2: memref<8x16xf32, #tpu.memory_space<vmem>>, %arg3: memref<8x16xf32, #tpu.memory_space<vmem>>, %arg4: memref<32x256xf32, #tpu.memory_space<vmem>>, %arg5: memref<1x256xf32, #tpu.memory_space<vmem>>, %arg6: memref<128x16xf32, #tpu.memory_space<vmem>>, %arg7: memref<1x16xf32, #tpu.memory_space<vmem>>, %arg8: memref<128x16xf32, #tpu.memory_space<vmem>>, %arg9: memref<1x16xf32, #tpu.memory_space<vmem>>, %arg10: memref<1x8x128xf32, #tpu.memory_space<vmem>>) attributes {dimension_semantics = [#tpu.dimension_semantics<parallel>], iteration_bounds = array<i64: 1>, scalar_prefetch = 0 : i64, scratch_operands = 0 : i64, tpu.core_type = #tpu.core_type<tc>, window_params = [{transform_indices = @transform_0, window_bounds = array<i64: 8, 32>}, {transform_indices = @transform_1, window_bounds = array<i64: 8, 16>}, {transform_indices = @transform_2, window_bounds = array<i64: 8, 16>}, {pipeline_mode = #tpu.pipeline_mode<synchronous>, transform_indices = @transform_3, window_bounds = array<i64: 32, 256>}, {pipeline_mode = #tpu.pipeline_mode<synchronous>, transform_indices = @transform_4, window_bounds = array<i64: 1, 256>}, {pipeline_mode = #tpu.pipeline_mode<synchronous>, transform_indices = @transform_5, window_bounds = array<i64: 128, 16>}, {pipeline_mode = #tpu.pipeline_mode<synchronous>, transform_indices = @transform_6, window_bounds = array<i64: 1, 16>}, {pipeline_mode = #tpu.pipeline_mode<synchronous>, transform_indices = @transform_7, window_bounds = array<i64: 128, 16>}, {pipeline_mode = #tpu.pipeline_mode<synchronous>, transform_indices = @transform_8, window_bounds = array<i64: 1, 16>}, {transform_indices = @transform_9, window_bounds = array<i64: 1, 8, 128>}]} {
    %c0 = arith.constant 0 : index
    %c0_0 = arith.constant 0 : index
    %0 = vector.load %arg1[%c0, %c0_0] : memref<8x32xf32, #tpu.memory_space<vmem>>, vector<8x32xf32>
    %c0_1 = arith.constant 0 : index
    %c0_2 = arith.constant 0 : index
    %1 = vector.load %arg4[%c0_1, %c0_2] : memref<32x256xf32, #tpu.memory_space<vmem>>, vector<32x256xf32>
    %cst = arith.constant dense<0.000000e+00> : vector<8x256xf32>
    %2 = tpu.matmul %0, %1, %cst {dimension_numbers = #tpu.dot_dimension_numbers<[1], [0], [0], [1], [0, 0, 1, 1], [], []>} : vector<8x32xf32>, vector<32x256xf32>, vector<8x256xf32> -> vector<8x256xf32>
    %c0_3 = arith.constant 0 : index
    %c0_4 = arith.constant 0 : index
    %3 = vector.load %arg5[%c0_3, %c0_4] : memref<1x256xf32, #tpu.memory_space<vmem>>, vector<1x256xf32>
    %4 = vector.broadcast %3 : vector<1x256xf32> to vector<8x256xf32>
    %5 = arith.addf %2, %4 : vector<8x256xf32>
    %cst_5 = arith.constant 0.000000e+00 : f32
    %6 = vector.broadcast %cst_5 : f32 to vector<8x256xf32>
    %7 = arith.maximumf %5, %6 : vector<8x256xf32>
    %8 = vector.extract_strided_slice %7 {offsets = [0, 0], sizes = [8, 128], strides = [1, 1]} : vector<8x256xf32> to vector<8x128xf32>
    %c0_6 = arith.constant 0 : index
    %c0_7 = arith.constant 0 : index
    %9 = vector.load %arg6[%c0_6, %c0_7] : memref<128x16xf32, #tpu.memory_space<vmem>>, vector<128x16xf32>
    %cst_8 = arith.constant dense<0.000000e+00> : vector<8x16xf32>
    %10 = tpu.matmul %8, %9, %cst_8 {dimension_numbers = #tpu.dot_dimension_numbers<[1], [0], [0], [1], [0, 0, 1, 1], [], []>} : vector<8x128xf32>, vector<128x16xf32>, vector<8x16xf32> -> vector<8x16xf32>
    %c0_9 = arith.constant 0 : index
    %c0_10 = arith.constant 0 : index
    %11 = vector.load %arg7[%c0_9, %c0_10] : memref<1x16xf32, #tpu.memory_space<vmem>>, vector<1x16xf32>
    %12 = vector.broadcast %11 : vector<1x16xf32> to vector<8x16xf32>
    %13 = arith.addf %10, %12 : vector<8x16xf32>
    %14 = vector.extract_strided_slice %7 {offsets = [0, 128], sizes = [8, 128], strides = [1, 1]} : vector<8x256xf32> to vector<8x128xf32>
    %c0_11 = arith.constant 0 : index
    %c0_12 = arith.constant 0 : index
    %15 = vector.load %arg8[%c0_11, %c0_12] : memref<128x16xf32, #tpu.memory_space<vmem>>, vector<128x16xf32>
    %cst_13 = arith.constant dense<0.000000e+00> : vector<8x16xf32>
    %16 = tpu.matmul %14, %15, %cst_13 {dimension_numbers = #tpu.dot_dimension_numbers<[1], [0], [0], [1], [0, 0, 1, 1], [], []>} : vector<8x128xf32>, vector<128x16xf32>, vector<8x16xf32> -> vector<8x16xf32>
    %c0_14 = arith.constant 0 : index
    %c0_15 = arith.constant 0 : index
    %17 = vector.load %arg9[%c0_14, %c0_15] : memref<1x16xf32, #tpu.memory_space<vmem>>, vector<1x16xf32>
    %18 = vector.broadcast %17 : vector<1x16xf32> to vector<8x16xf32>
    %19 = arith.addf %16, %18 : vector<8x16xf32>
    %20 = math.tanh %19 : vector<8x16xf32>
    %cst_16 = arith.constant 0.000000e+00 : f32
    %21 = vector.broadcast %cst_16 : f32 to vector<8x16xf32>
    %22 = arith.subf %21, %20 : vector<8x16xf32>
    %23 = math.exp %22 : vector<8x16xf32>
    %c0_17 = arith.constant 0 : index
    %c0_18 = arith.constant 0 : index
    %24 = vector.load %arg2[%c0_17, %c0_18] : memref<8x16xf32, #tpu.memory_space<vmem>>, vector<8x16xf32>
    %c0_19 = arith.constant 0 : index
    %c0_20 = arith.constant 0 : index
    %25 = vector.load %arg3[%c0_19, %c0_20] : memref<8x16xf32, #tpu.memory_space<vmem>>, vector<8x16xf32>
    %26 = arith.subf %24, %25 : vector<8x16xf32>
    %cst_21 = arith.constant 2.000000e+00 : f32
    %27 = vector.broadcast %cst_21 : f32 to vector<8x16xf32>
    %28 = arith.mulf %27, %13 : vector<8x16xf32>
    %29 = arith.subf %28, %24 : vector<8x16xf32>
    %30 = arith.subf %29, %25 : vector<8x16xf32>
    %31 = arith.mulf %26, %30 : vector<8x16xf32>
    %32 = arith.mulf %31, %23 : vector<8x16xf32>
    %33 = vector.shape_cast %32 : vector<8x16xf32> to vector<1x8x16xf32>
    %cst_22 = arith.constant dense<0.000000e+00> : vector<1xf32>
    %34 = vector.multi_reduction <add>, %33, %cst_22 [1, 2] : vector<1x8x16xf32> to vector<1xf32>
    %35 = vector.shape_cast %34 : vector<1xf32> to vector<1x1x1xf32>
    %36 = vector.extract %35[0, 0, 0] : f32 from vector<1x1x1xf32>
    %37 = vector.broadcast %36 : f32 to vector<1x8x128xf32>
    %c0_23 = arith.constant 0 : index
    %c0_24 = arith.constant 0 : index
    %c0_25 = arith.constant 0 : index
    %38 = vector.load %arg10[%c0_23, %c0_24, %c0_25] : memref<1x8x128xf32, #tpu.memory_space<vmem>>, vector<1x8x128xf32>
    tpu.vector_store %arg10[%c0_23, %c0_24, %c0_25], %37 {strides = array<i32>} : memref<1x8x128xf32, #tpu.memory_space<vmem>>, vector<1x8x128xf32>,
    return
  }
  func.func @transform_0(%arg0: i32) -> (i32, i32) {
    %c0_i32 = arith.constant 0 : i32
    %c0_i32_0 = arith.constant 0 : i32
    return %arg0, %c0_i32 : i32, i32
  }
  func.func @transform_1(%arg0: i32) -> (i32, i32) {
    %c0_i32 = arith.constant 0 : i32
    %c0_i32_0 = arith.constant 0 : i32
    return %arg0, %c0_i32 : i32, i32
  }
  func.func @transform_2(%arg0: i32) -> (i32, i32) {
    %c0_i32 = arith.constant 0 : i32
    %c0_i32_0 = arith.constant 0 : i32
    return %arg0, %c0_i32 : i32, i32
  }
  func.func @transform_3(%arg0: i32) -> (i32, i32) {
    %c0_i32 = arith.constant 0 : i32
    %c0_i32_0 = arith.constant 0 : i32
    %c0_i32_1 = arith.constant 0 : i32
    return %c0_i32, %c0_i32_0 : i32, i32
  }
  func.func @transform_4(%arg0: i32) -> (i32, i32) {
    %c0_i32 = arith.constant 0 : i32
    %c0_i32_0 = arith.constant 0 : i32
    %c0_i32_1 = arith.constant 0 : i32
    return %c0_i32, %c0_i32_0 : i32, i32
  }
  func.func @transform_5(%arg0: i32) -> (i32, i32) {
    %c0_i32 = arith.constant 0 : i32
    %c0_i32_0 = arith.constant 0 : i32
    %c0_i32_1 = arith.constant 0 : i32
    return %c0_i32, %c0_i32_0 : i32, i32
  }
  func.func @transform_6(%arg0: i32) -> (i32, i32) {
    %c0_i32 = arith.constant 0 : i32
    %c0_i32_0 = arith.constant 0 : i32
    %c0_i32_1 = arith.constant 0 : i32
    return %c0_i32, %c0_i32_0 : i32, i32
  }
  func.func @transform_7(%arg0: i32) -> (i32, i32) {
    %c0_i32 = arith.constant 0 : i32
    %c0_i32_0 = arith.constant 0 : i32
    %c0_i32_1 = arith.constant 0 : i32
    return %c0_i32, %c0_i32_0 : i32, i32
  }
  func.func @transform_8(%arg0: i32) -> (i32, i32) {
    %c0_i32 = arith.constant 0 : i32
    %c0_i32_0 = arith.constant 0 : i32
    %c0_i32_1 = arith.constant 0 : i32
    return %c0_i32, %c0_i32_0 : i32, i32
  }
  func.func @transform_9(%arg0: i32) -> (i32, i32, i32) {
    %c0_i32 = arith.constant 0 : i32
    %c0_i32_0 = arith.constant 0 : i32
    %c0_i32_1 = arith.constant 0 : i32
    return %arg0, %c0_i32, %c0_i32_0 : i32, i32, i32
  }
}

</mosaic_0001>

<bundles_post_ra>
// kernel: tpu_custom_call.1
= control target key start
LH: loop header
LB: loop body
LE: loop exit
PB: predicated region body
PF: predicated region fallthrough
CT: control target
= control target key end

     0   :  { %v494_v4 = vmov 0.0   ;;  %vm54_vm0 = vcmask 261120   ;;  %s723_s0 = inlined_call_operand.vmem [shape: f32[8,32], index: 0, kind: input, shape index: {}]   ;;  %s724_s1 = inlined_call_operand.vmem [shape: f32[8,16], index: 1, kind: input, shape index: {}]   ;;  %s725_s2 = inlined_call_operand.vmem [shape: f32[8,16], index: 2, kind: input, shape index: {}]   ;;  %s726_s3 = inlined_call_operand.vmem [shape: f32[32,256], index: 3, kind: input, shape index: {}]   ;;  %s727_s4 = inlined_call_operand.vmem [shape: f32[1,256], index: 4, kind: input, shape index: {}]   ;;  %s728_s5 = inlined_call_operand.vmem [shape: f32[128,16], index: 5, kind: input, shape index: {}]   ;;  %s729_s6 = inlined_call_operand.vmem [shape: f32[1,16], index: 6, kind: input, shape index: {}]   ;;  %s730_s7 = inlined_call_operand.vmem [shape: f32[128,16], index: 7, kind: input, shape index: {}]   ;;  %s731_s8 = inlined_call_operand.vmem [shape: f32[1,16], index: 8, kind: input, shape index: {}]   ;;  %s732_s9 = inlined_call_operand.hbm [shape: f32[1,8,128], index: 9, kind: output, shape index: {}]  }
   0x1   :  { %v41_v0 = vld [vmem:[%s726_s3 + $0x38] sm:$0xff]  ;;  %v40_v1 = vld [vmem:[%s726_s3 + $0x30] sm:$0xff]  ;;  %v39_v2 = vld [vmem:[%s726_s3 + $0x28] sm:$0xff]  ;;  %122 = vmatprep.mubr.f32.mxu0 %v494_v4  ;;  %393 = vmatprep.subr.mxu1 %v494_v4 }
   0x2   :  { %82 = vmatprep.subr.mxu0 %v41_v0  ;;  %v38_v3 = vld [vmem:[%s726_s3 + $0x20] sm:$0xff]  ;;  %v37_v5 = vld [vmem:[%s726_s3 + $0x18] sm:$0xff]  ;;  %v36_v6 = vld [vmem:[%s726_s3 + $0x10] sm:$0xff] }
   0x3   :  { %83 = vmatpush1.msra.mxu0 %v40_v1  ;;  %v146_v7 = vld [vmem:[%s728_s5 + $0x78] sm:$0xff]  ;;  %v145_v8 = vld [vmem:[%s728_s5 + $0x70] sm:$0xff]  ;;  %v35_v9 = vld [vmem:[%s726_s3 + $0x8] sm:$0xff] }
   0x4   :  { %84 = vmatprep.subr.mxu0 %v39_v2  ;;  %394 = vmatpush3.msra.mxu1 %v146_v7  ;;  %v34_v10 = vld [vmem:[%s726_s3] sm:$0xff]  ;;  %v144_v11 = vld [vmem:[%s728_s5 + $0x68] sm:$0xff]  ;;  %v239_v13 = vld [vmem:[%s730_s7 + $0x78] sm:$0xff] }
   0x5   :  { %85 = vmatpush1.msra.mxu0 %v38_v3  ;;  %395 = vmatprep.subr.mxu1 %v494_v4  ;;  %v33_v12 = vld [vmem:[%s723_s0] sm:$0xff]  ;;  %v238_v15 = vld [vmem:[%s730_s7 + $0x70] sm:$0xff]  ;;  %v142_v16 = vld [vmem:[%s728_s5 + $0x58] sm:$0xff] }
   0x6   :  { %86 = vmatprep.subr.mxu0 %v37_v5  ;;  %396 = vmatpush3.msra.mxu1 %v145_v8  ;;  %v143_v14 = vld [vmem:[%s728_s5 + $0x60] sm:$0xff]  ;;  %v237_v17 = vld [vmem:[%s730_s7 + $0x68] sm:$0xff] }
   0x7   :  { %87 = vmatpush1.msra.mxu0 %v36_v6  ;;  %397 = vmatprep.subr.mxu1 %v494_v4 }
   0x8   :  { %88 = vmatprep.subr.mxu0 %v35_v9  ;;  %398 = vmatpush3.msra.mxu1 %v144_v11 }
   0x9   :  { %89 = vmatpush1.msra.mxu0 %v34_v10  ;;  %399 = vmatprep.subr.mxu1 %v494_v4 }
   0xa   :  { %356 = vmatmul.mubr.msk.f32.vlgmr.msra.gmra.mxu0 %vm54_vm0, %v33_v12  ;;  %428 = vmatprep.subr.mxu0 %v494_v4 }
   0xb   :  { %429 = vmatpush3.msra.mxu0 %v239_v13  ;;  %400 = vmatpush3.msra.mxu1 %v143_v14 }
   0xc   :  { %430 = vmatprep.subr.mxu0 %v494_v4 }
   0xd   :  { %14 = vsyncpa [#allocation3], 0  ;;  %431 = vmatpush3.msra.mxu0 %v238_v15  ;;  %401 = vmatprep.subr.mxu1 %v494_v4  ;;  %v141_v18 = vld [vmem:[%s728_s5 + $0x50] sm:$0xff]  ;;  %v236_v19 = vld [vmem:[%s730_s7 + $0x60] sm:$0xff]  ;;  %vm495_vm1 = vmmov 0   ;;  %v44_v42 = vlaneseq  ;;  %vm329_vm2 = vcmask 130048  }
   0xe   :  { %432 = vmatprep.subr.mxu0 %v494_v4  ;;  %402 = vmatpush3.msra.mxu1 %v142_v16  ;;  %v140_v20 = vld [vmem:[%s728_s5 + $0x48] sm:$0xff]  ;;  %v235_v21 = vld [vmem:[%s730_s7 + $0x58] sm:$0xff]  ;;  %v139_v22 = vld [vmem:[%s728_s5 + $0x40] sm:$0xff] }
   0xf   :  { %433 = vmatpush3.msra.mxu0 %v237_v17  ;;  %403 = vmatprep.subr.mxu1 %v494_v4  ;;  %v234_v23 = vld [vmem:[%s730_s7 + $0x50] sm:$0xff]  ;;  %v138_v24 = vld [vmem:[%s728_s5 + $0x38] sm:$0xff]  ;;  %v233_v25 = vld [vmem:[%s730_s7 + $0x48] sm:$0xff]  ;;  %v45_v43 = vshrl.u32 %v44_v42, 7 }
  0x10   :  { %434 = vmatprep.subr.mxu0 %v494_v4  ;;  %404 = vmatpush3.msra.mxu1 %v141_v18  ;;  %v137_v26 = vld [vmem:[%s728_s5 + $0x30] sm:$0xff]  ;;  %v232_v27 = vld [vmem:[%s730_s7 + $0x40] sm:$0xff]  ;;  %v136_v28 = vld [vmem:[%s728_s5 + $0x28] sm:$0xff] }
  0x11   :  { %435 = vmatpush3.msra.mxu0 %v236_v19  ;;  %405 = vmatprep.subr.mxu1 %v494_v4  ;;  %v231_v29 = vld [vmem:[%s730_s7 + $0x38] sm:$0xff]  ;;  %v135_v30 = vld [vmem:[%s728_s5 + $0x20] sm:$0xff]  ;;  %v230_v31 = vld [vmem:[%s730_s7 + $0x30] sm:$0xff]  ;;  %v46_v44 = vsub.s32 0, %v45_v43  ;;  %v50_v46 = vsub.s32 1, %v45_v43 }
  0x12   :  { %436 = vmatprep.subr.mxu0 %v494_v4  ;;  %406 = vmatpush3.msra.mxu1 %v140_v20  ;;  %v134_v32 = vld [vmem:[%s728_s5 + $0x18] sm:$0xff]  ;;  %v229_v33 = vld [vmem:[%s730_s7 + $0x28] sm:$0xff]  ;;  %v228_v34 = vld [vmem:[%s730_s7 + $0x20] sm:$0xff] }
  0x13   :  { %437 = vmatpush3.msra.mxu0 %v235_v21  ;;  %407 = vmatprep.subr.mxu1 %v494_v4  ;;  %v133_v35 = vld [vmem:[%s728_s5 + $0x10] sm:$0xff]  ;;  %v227_v36 = vld [vmem:[%s730_s7 + $0x18] sm:$0xff]  ;;  %v132_v37 = vld [vmem:[%s728_s5 + $0x8] sm:$0xff] }
  0x14   :  { %438 = vmatprep.subr.mxu0 %v494_v4  ;;  %408 = vmatpush3.msra.mxu1 %v139_v22  ;;  %v226_v38 = vld [vmem:[%s730_s7 + $0x10] sm:$0xff]  ;;  %v131_v39 = vld [vmem:[%s728_s5] sm:$0xff]  ;;  %v225_v40 = vld [vmem:[%s730_s7 + $0x8] sm:$0xff] }
  0x15   :  { %439 = vmatpush3.msra.mxu0 %v234_v23  ;;  %409 = vmatprep.subr.mxu1 %v494_v4  ;;  %v224_v41 = vld [vmem:[%s730_s7] sm:$0xff] }
  0x16   :  { %440 = vmatprep.subr.mxu0 %v494_v4  ;;  %410 = vmatpush3.msra.mxu1 %v138_v24  ;;  %v42_v45 = vld [vmem:[%s727_s4] sm:$0x3] }
  0x17   :  { %441 = vmatpush3.msra.mxu0 %v233_v25  ;;  %411 = vmatprep.subr.mxu1 %v494_v4  ;;  %v47_v47 = vrot.slane %v42_v45, %v46_v44  ;;  %v51_v48 = vrot.slane %v42_v45, %v50_v46  ;;  %v358_v56 = vld [vmem:[%s731_s8] ss:$0 sm:$0xff] }
  0x18   :  { %442 = vmatprep.subr.mxu0 %v494_v4  ;;  %412 = vmatpush3.msra.mxu1 %v137_v26  ;;  %v357_v61 = vld [vmem:[%s729_s6] ss:$0 sm:$0xff] }
  0x19   :  { %443 = vmatpush3.msra.mxu0 %v232_v27  ;;  %413 = vmatprep.subr.mxu1 %v494_v4  ;;  %v321_v3 = vld [vmem:[%s724_s1] sm:$0xff]  ;;  %s496_s1 = smov [#allocation2]  }
  0x1a   :  { %444 = vmatprep.subr.mxu0 %v494_v4  ;;  %414 = vmatpush3.msra.mxu1 %v136_v28  ;;  %v322_v5 = vld [vmem:[%s725_s2] sm:$0xff]  ;;  %s348_s6 = sshll.u32 %s496_s1, 4  ;;  %s349_s6 = int_to_ptr.vmem [resolvable:$true] %s348_s6 }
  0x1b   :  { %445 = vmatpush3.msra.mxu0 %v231_v29  ;;  %415 = vmatprep.subr.mxu1 %v494_v4  ;;  %v323_v6 = vsub.f32 %v321_v3, %v322_v5  ;;  %s472_s2 = scalar_lea.vmem %s349_s6, 128  ;;  %p477_p1 = scmp.lt.s32.totalorder %s349_s6, %s349_s6 }
  0x1c   :  { %446 = vmatprep.subr.mxu0 %v494_v4  ;;  %416 = vmatpush3.msra.mxu1 %v135_v30  ;;  %p473_p0 = scmp.ne.s32.totalorder %s349_s6, %s472_s2  ;;  %p478_p2 = scmp.lt.s32.totalorder %s472_s2, %s472_s2 }
  0x1d   :  { %447 = vmatpush3.msra.mxu0 %v230_v31  ;;  %417 = vmatprep.subr.mxu1 %v494_v4 }
  0x1e   :  { %448 = vmatprep.subr.mxu0 %v494_v4  ;;  %418 = vmatpush3.msra.mxu1 %v134_v32  ;;  %p479_p3 = por %p478_p2, %p477_p1 }
  0x1f   :  { %449 = vmatpush3.msra.mxu0 %v229_v33  ;;  %419 = vmatprep.subr.mxu1 %v494_v4 }
  0x20   :  { %450 = vmatprep.subr.mxu0 %v494_v4  ;;  %420 = vmatpush3.msra.mxu1 %v133_v35  ;;  %p480_p4 = pnand %p479_p3, %p473_p0 }
  0x21   :  { %451 = vmatpush3.msra.mxu0 %v228_v34  ;;  %421 = vmatprep.subr.mxu1 %v494_v4 }
  0x22   :  { %452 = vmatprep.subr.mxu0 %v494_v4  ;;  %422 = vmatpush3.msra.mxu1 %v132_v37 }
  0x23   :  { %453 = vmatpush3.msra.mxu0 %v227_v36  ;;  %423 = vmatprep.subr.mxu1 %v494_v4 }
  0x24   :  { %454 = vmatprep.subr.mxu0 %v494_v4  ;;  %424 = vmatpush3.msra.mxu1 %v131_v39 }
  0x25   :  { %455 = vmatpush3.msra.mxu0 %v226_v38  ;;  %425 = vmatprep.mubr.msk.f32.mxu1 %vm495_vm1, %v494_v4 }
  0x26   :  { %456 = vmatprep.subr.mxu0 %v494_v4  ;;  %460 = vmatprep.mubr.msk.f32.mxu0 %vm495_vm1, %v494_v4 }
  0x27   :  { %457 = vmatpush3.msra.mxu0 %v225_v40 }
  0x28   :  { %458 = vmatprep.subr.mxu0 %v494_v4 }
  0x29   :  { %459 = vmatpush3.msra.mxu0 %v224_v41 }
  0xca   :  { %v124_v49 = vpop.f32.mrf.mxu0 }
  0xcb   :  { %v125_v50 = vadd.f32 %v124_v49, %v47_v47 }
  0xcc   :  { %v126_v51 = vpop.f32.mrf.mxu0 }
  0xcd   :  { %v129_v52 = vmax.f32 %v125_v50, 0.0  ;;  %v127_v53 = vadd.f32 %v126_v51, %v51_v48 }
  0xcf   :  { %v130_v54 = vmax.f32 %v127_v53, 0.0  ;;  %426 = vmatmul.mubr.f32.vlgmr.msra.gmra.mxu1 %v129_v52 }
  0xd1   :  { %461 = vmatmul.mubr.f32.vlgmr.msra.gmra.mxu0 %v130_v54 }
 0x18f   :  { %v220_v55 = vpop.f32.mrf.mxu1 }
 0x190   :  { %v221_v63 = vadd.f32 %v357_v61, %v220_v55 }
 0x191   :  { %v427_v57 = vpop.f32.mrf.mxu1  ;;  %v313_v58 = vpop.f32.mrf.mxu0 }
 0x192   :  { %v314_v59 = vadd.f32 %v358_v56, %v313_v58  ;;  %v324_v2 = vmul.f32 2.0, %v221_v63 }
 0x193   :  { %v462_v60 = vpop.f32.mrf.mxu0 }
 0x194   :  { %468 = vtanh.f32 %v314_v59  ;;  %v325_v4 = vsub.f32 %v324_v2, %v321_v3 }
 0x196   :  { %v326_v7 = vsub.f32 %v325_v4, %v322_v5 }
 0x198   :  { %v327_v8 = vmul.f32 %v326_v7, %v323_v6 }
 0x1a1   :  { %v469_v62 = vpop.eup %468 }
 0x1a2   :  { %v318_v0 = vsub.f32 0.0, %v469_v62 }
 0x1a4   :  { %v319_v1 = vmul.f32 1.442695, %v318_v0 }
 0x1a6   :  { %470 = vpow2.f32 %v319_v1 }
 0x1b3   :  { %v471_v9 = vpop.eup %470 }
 0x1b4   :  { %v328_v10 = vmul.f32 %v471_v9, %v327_v8 }
 0x1b6   :  { %v330_v11 = vsel %vm329_vm2, %v328_v10, 0.0 }
 0x1b7   :  { %331 = vadd.xlane.f32.xlu0 %v330_v11 }
 0x240   :  { %v332_v12 = vpop.xlane.xlu0 %331 }
 0x241   :  { %v333_v13 = vrot.slane %v332_v12, 4 }
 0x243   :  { %v334_v14 = vadd.f32 %v333_v13, %v332_v12 }
 0x245   :  { %v335_v15 = vrot.slane %v334_v14, 2 }
 0x247   :  { %v336_v16 = vadd.f32 %v335_v15, %v334_v14 }
 0x249   :  { %v337_v17 = vrot.slane %v336_v16, 1 }
 0x24b   :  { %v338_v18 = vadd.f32 %v337_v17, %v336_v16 }
 0x24d   :  { %463 = vpush %v338_v18 }
 0x27e   :  { %s464_s28 = spop %463 }
 0x27f   :  { %v340_v19 = vstv %s464_s28 }
 0x280   :  { %341 = vst [vmem:[#allocation2] sm:$0xff] %v340_v19 }
 0x281   :  { %483 = shalt.err (!%p480_p4)
}
 0x282   :  { %351 = dma.vmem_to_hbm [thread:$0]  %s349_s6, 128, %s732_s9, [#allocation3]  }
 0x283   :  { %492 = dma.done.wait [#allocation3], 128  }
 0x284   :  { %493 = vsyncadd [#allocation3], 4294967168 }
 0x285   :  { %355 = vsyncpa [#allocation3], 1 }

// kernel: tpu_custom_call.1
= control target key start
LH: loop header
LB: loop body
LE: loop exit
PB: predicated region body
PF: predicated region fallthrough
CT: control target
= control target key end

     0   :  { %v494_v4 = vmov 0.0   ;;  %vm54_vm0 = vcmask 261120   ;;  %s723_s0 = inlined_call_operand.vmem [shape: f32[8,32], index: 0, kind: input, shape index: {}]   ;;  %s724_s1 = inlined_call_operand.vmem [shape: f32[8,16], index: 1, kind: input, shape index: {}]   ;;  %s725_s2 = inlined_call_operand.vmem [shape: f32[8,16], index: 2, kind: input, shape index: {}]   ;;  %s726_s3 = inlined_call_operand.vmem [shape: f32[32,256], index: 3, kind: input, shape index: {}]   ;;  %s727_s4 = inlined_call_operand.vmem [shape: f32[1,256], index: 4, kind: input, shape index: {}]   ;;  %s728_s5 = inlined_call_operand.vmem [shape: f32[128,16], index: 5, kind: input, shape index: {}]   ;;  %s729_s6 = inlined_call_operand.vmem [shape: f32[1,16], index: 6, kind: input, shape index: {}]   ;;  %s730_s7 = inlined_call_operand.vmem [shape: f32[128,16], index: 7, kind: input, shape index: {}]   ;;  %s731_s8 = inlined_call_operand.vmem [shape: f32[1,16], index: 8, kind: input, shape index: {}]   ;;  %s732_s9 = inlined_call_operand.hbm [shape: f32[1,8,128], index: 9, kind: output, shape index: {}]  }
   0x1   :  { %v41_v0 = vld [vmem:[%s726_s3 + $0x38] sm:$0xff]  ;;  %v40_v1 = vld [vmem:[%s726_s3 + $0x30] sm:$0xff]  ;;  %v39_v2 = vld [vmem:[%s726_s3 + $0x28] sm:$0xff]  ;;  %122 = vmatprep.mubr.f32.mxu0 %v494_v4  ;;  %393 = vmatprep.subr.mxu1 %v494_v4 }
   0x2   :  { %82 = vmatprep.subr.mxu0 %v41_v0  ;;  %v38_v3 = vld [vmem:[%s726_s3 + $0x20] sm:$0xff]  ;;  %v37_v5 = vld [vmem:[%s726_s3 + $0x18] sm:$0xff]  ;;  %v36_v6 = vld [vmem:[%s726_s3 + $0x10] sm:$0xff] }
   0x3   :  { %83 = vmatpush1.msra.mxu0 %v40_v1  ;;  %v146_v7 = vld [vmem:[%s728_s5 + $0x78] sm:$0xff]  ;;  %v145_v8 = vld [vmem:[%s728_s5 + $0x70] sm:$0xff]  ;;  %v35_v9 = vld [vmem:[%s726_s3 + $0x8] sm:$0xff] }
   0x4   :  { %84 = vmatprep.subr.mxu0 %v39_v2  ;;  %394 = vmatpush3.msra.mxu1 %v146_v7  ;;  %v34_v10 = vld [vmem:[%s726_s3] sm:$0xff]  ;;  %v144_v11 = vld [vmem:[%s728_s5 + $0x68] sm:$0xff]  ;;  %v239_v13 = vld [vmem:[%s730_s7 + $0x78] sm:$0xff] }
   0x5   :  { %85 = vmatpush1.msra.mxu0 %v38_v3  ;;  %395 = vmatprep.subr.mxu1 %v494_v4  ;;  %v33_v12 = vld [vmem:[%s723_s0] sm:$0xff]  ;;  %v238_v15 = vld [vmem:[%s730_s7 + $0x70] sm:$0xff]  ;;  %v142_v16 = vld [vmem:[%s728_s5 + $0x58] sm:$0xff] }
   0x6   :  { %86 = vmatprep.subr.mxu0 %v37_v5  ;;  %396 = vmatpush3.msra.mxu1 %v145_v8  ;;  %v143_v14 = vld [vmem:[%s728_s5 + $0x60] sm:$0xff]  ;;  %v237_v17 = vld [vmem:[%s730_s7 + $0x68] sm:$0xff] }
   0x7   :  { %87 = vmatpush1.msra.mxu0 %v36_v6  ;;  %397 = vmatprep.subr.mxu1 %v494_v4 }
   0x8   :  { %88 = vmatprep.subr.mxu0 %v35_v9  ;;  %398 = vmatpush3.msra.mxu1 %v144_v11 }
   0x9   :  { %89 = vmatpush1.msra.mxu0 %v34_v10  ;;  %399 = vmatprep.subr.mxu1 %v494_v4 }
   0xa   :  { %356 = vmatmul.mubr.msk.f32.vlgmr.msra.gmra.mxu0 %vm54_vm0, %v33_v12  ;;  %428 = vmatprep.subr.mxu0 %v494_v4 }
   0xb   :  { %429 = vmatpush3.msra.mxu0 %v239_v13  ;;  %400 = vmatpush3.msra.mxu1 %v143_v14 }
   0xc   :  { %430 = vmatprep.subr.mxu0 %v494_v4 }
   0xd   :  { %14 = vsyncpa [#allocation3], 0  ;;  %431 = vmatpush3.msra.mxu0 %v238_v15  ;;  %401 = vmatprep.subr.mxu1 %v494_v4  ;;  %v141_v18 = vld [vmem:[%s728_s5 + $0x50] sm:$0xff]  ;;  %v236_v19 = vld [vmem:[%s730_s7 + $0x60] sm:$0xff]  ;;  %vm495_vm1 = vmmov 0   ;;  %v44_v42 = vlaneseq  ;;  %vm329_vm2 = vcmask 130048  }
   0xe   :  { %432 = vmatprep.subr.mxu0 %v494_v4  ;;  %402 = vmatpush3.msra.mxu1 %v142_v16  ;;  %v140_v20 = vld [vmem:[%s728_s5 + $0x48] sm:$0xff]  ;;  %v235_v21 = vld [vmem:[%s730_s7 + $0x58] sm:$0xff]  ;;  %v139_v22 = vld [vmem:[%s728_s5 + $0x40] sm:$0xff] }
   0xf   :  { %433 = vmatpush3.msra.mxu0 %v237_v17  ;;  %403 = vmatprep.subr.mxu1 %v494_v4  ;;  %v234_v23 = vld [vmem:[%s730_s7 + $0x50] sm:$0xff]  ;;  %v138_v24 = vld [vmem:[%s728_s5 + $0x38] sm:$0xff]  ;;  %v233_v25 = vld [vmem:[%s730_s7 + $0x48] sm:$0xff]  ;;  %v45_v43 = vshrl.u32 %v44_v42, 7 }
  0x10   :  { %434 = vmatprep.subr.mxu0 %v494_v4  ;;  %404 = vmatpush3.msra.mxu1 %v141_v18  ;;  %v137_v26 = vld [vmem:[%s728_s5 + $0x30] sm:$0xff]  ;;  %v232_v27 = vld [vmem:[%s730_s7 + $0x40] sm:$0xff]  ;;  %v136_v28 = vld [vmem:[%s728_s5 + $0x28] sm:$0xff] }
  0x11   :  { %435 = vmatpush3.msra.mxu0 %v236_v19  ;;  %405 = vmatprep.subr.mxu1 %v494_v4  ;;  %v231_v29 = vld [vmem:[%s730_s7 + $0x38] sm:$0xff]  ;;  %v135_v30 = vld [vmem:[%s728_s5 + $0x20] sm:$0xff]  ;;  %v230_v31 = vld [vmem:[%s730_s7 + $0x30] sm:$0xff]  ;;  %v46_v44 = vsub.s32 0, %v45_v43  ;;  %v50_v46 = vsub.s32 1, %v45_v43 }
  0x12   :  { %436 = vmatprep.subr.mxu0 %v494_v4  ;;  %406 = vmatpush3.msra.mxu1 %v140_v20  ;;  %v134_v32 = vld [vmem:[%s728_s5 + $0x18] sm:$0xff]  ;;  %v229_v33 = vld [vmem:[%s730_s7 + $0x28] sm:$0xff]  ;;  %v228_v34 = vld [vmem:[%s730_s7 + $0x20] sm:$0xff] }
  0x13   :  { %437 = vmatpush3.msra.mxu0 %v235_v21  ;;  %407 = vmatprep.subr.mxu1 %v494_v4  ;;  %v133_v35 = vld [vmem:[%s728_s5 + $0x10] sm:$0xff]  ;;  %v227_v36 = vld [vmem:[%s730_s7 + $0x18] sm:$0xff]  ;;  %v132_v37 = vld [vmem:[%s728_s5 + $0x8] sm:$0xff] }
  0x14   :  { %438 = vmatprep.subr.mxu0 %v494_v4  ;;  %408 = vmatpush3.msra.mxu1 %v139_v22  ;;  %v226_v38 = vld [vmem:[%s730_s7 + $0x10] sm:$0xff]  ;;  %v131_v39 = vld [vmem:[%s728_s5] sm:$0xff]  ;;  %v225_v40 = vld [vmem:[%s730_s7 + $0x8] sm:$0xff] }
  0x15   :  { %439 = vmatpush3.msra.mxu0 %v234_v23  ;;  %409 = vmatprep.subr.mxu1 %v494_v4  ;;  %v224_v41 = vld [vmem:[%s730_s7] sm:$0xff] }
  0x16   :  { %440 = vmatprep.subr.mxu0 %v494_v4  ;;  %410 = vmatpush3.msra.mxu1 %v138_v24  ;;  %v42_v45 = vld [vmem:[%s727_s4] sm:$0x3] }
  0x17   :  { %441 = vmatpush3.msra.mxu0 %v233_v25  ;;  %411 = vmatprep.subr.mxu1 %v494_v4  ;;  %v47_v47 = vrot.slane %v42_v45, %v46_v44  ;;  %v51_v48 = vrot.slane %v42_v45, %v50_v46  ;;  %v358_v56 = vld [vmem:[%s731_s8] ss:$0 sm:$0xff] }
  0x18   :  { %442 = vmatprep.subr.mxu0 %v494_v4  ;;  %412 = vmatpush3.msra.mxu1 %v137_v26  ;;  %v357_v61 = vld [vmem:[%s729_s6] ss:$0 sm:$0xff] }
  0x19   :  { %443 = vmatpush3.msra.mxu0 %v232_v27  ;;  %413 = vmatprep.subr.mxu1 %v494_v4  ;;  %v321_v3 = vld [vmem:[%s724_s1] sm:$0xff]  ;;  %s496_s1 = smov [#allocation2]  }
  0x1a   :  { %444 = vmatprep.subr.mxu0 %v494_v4  ;;  %414 = vmatpush3.msra.mxu1 %v136_v28  ;;  %v322_v5 = vld [vmem:[%s725_s2] sm:$0xff]  ;;  %s348_s6 = sshll.u32 %s496_s1, 4  ;;  %s349_s6 = int_to_ptr.vmem [resolvable:$true] %s348_s6 }
  0x1b   :  { %445 = vmatpush3.msra.mxu0 %v231_v29  ;;  %415 = vmatprep.subr.mxu1 %v494_v4  ;;  %v323_v6 = vsub.f32 %v321_v3, %v322_v5  ;;  %s472_s2 = scalar_lea.vmem %s349_s6, 128  ;;  %p477_p1 = scmp.lt.s32.totalorder %s349_s6, %s349_s6 }
  0x1c   :  { %446 = vmatprep.subr.mxu0 %v494_v4  ;;  %416 = vmatpush3.msra.mxu1 %v135_v30  ;;  %p473_p0 = scmp.ne.s32.totalorder %s349_s6, %s472_s2  ;;  %p478_p2 = scmp.lt.s32.totalorder %s472_s2, %s472_s2 }
  0x1d   :  { %447 = vmatpush3.msra.mxu0 %v230_v31  ;;  %417 = vmatprep.subr.mxu1 %v494_v4 }
  0x1e   :  { %448 = vmatprep.subr.mxu0 %v494_v4  ;;  %418 = vmatpush3.msra.mxu1 %v134_v32  ;;  %p479_p3 = por %p478_p2, %p477_p1 }
  0x1f   :  { %449 = vmatpush3.msra.mxu0 %v229_v33  ;;  %419 = vmatprep.subr.mxu1 %v494_v4 }
  0x20   :  { %450 = vmatprep.subr.mxu0 %v494_v4  ;;  %420 = vmatpush3.msra.mxu1 %v133_v35  ;;  %p480_p4 = pnand %p479_p3, %p473_p0 }
  0x21   :  { %451 = vmatpush3.msra.mxu0 %v228_v34  ;;  %421 = vmatprep.subr.mxu1 %v494_v4 }
  0x22   :  { %452 = vmatprep.subr.mxu0 %v494_v4  ;;  %422 = vmatpush3.msra.mxu1 %v132_v37 }
  0x23   :  { %453 = vmatpush3.msra.mxu0 %v227_v36  ;;  %423 = vmatprep.subr.mxu1 %v494_v4 }
  0x24   :  { %454 = vmatprep.subr.mxu0 %v494_v4  ;;  %424 = vmatpush3.msra.mxu1 %v131_v39 }
  0x25   :  { %455 = vmatpush3.msra.mxu0 %v226_v38  ;;  %425 = vmatprep.mubr.msk.f32.mxu1 %vm495_vm1, %v494_v4 }
  0x26   :  { %456 = vmatprep.subr.mxu0 %v494_v4  ;;  %460 = vmatprep.mubr.msk.f32.mxu0 %vm495_vm1, %v494_v4 }
  0x27   :  { %457 = vmatpush3.msra.mxu0 %v225_v40 }
  0x28   :  { %458 = vmatprep.subr.mxu0 %v494_v4 }
  0x29   :  { %459 = vmatpush3.msra.mxu0 %v224_v41 }
  0xca   :  { %v124_v49 = vpop.f32.mrf.mxu0 }
  0xcb   :  { %v125_v50 = vadd.f32 %v124_v49, %v47_v47 }
  0xcc   :  { %v126_v51 = vpop.f32.mrf.mxu0 }
  0xcd   :  { %v129_v52 = vmax.f32 %v125_v50, 0.0  ;;  %v127_v53 = vadd.f32 %v126_v51, %v51_v48 }
  0xcf   :  { %v130_v54 = vmax.f32 %v127_v53, 0.0  ;;  %426 = vmatmul.mubr.f32.vlgmr.msra.gmra.mxu1 %v129_v52 }
  0xd1   :  { %461 = vmatmul.mubr.f32.vlgmr.msra.gmra.mxu0 %v130_v54 }
 0x18f   :  { %v220_v55 = vpop.f32.mrf.mxu1 }
 0x190   :  { %v221_v63 = vadd.f32 %v357_v61, %v220_v55 }
 0x191   :  { %v427_v57 = vpop.f32.mrf.mxu1  ;;  %v313_v58 = vpop.f32.mrf.mxu0 }
 0x192   :  { %v314_v59 = vadd.f32 %v358_v56, %v313_v58  ;;  %v324_v2 = vmul.f32 2.0, %v221_v63 }
 0x193   :  { %v462_v60 = vpop.f32.mrf.mxu0 }
 0x194   :  { %468 = vtanh.f32 %v314_v59  ;;  %v325_v4 = vsub.f32 %v324_v2, %v321_v3 }
 0x196   :  { %v326_v7 = vsub.f32 %v325_v4, %v322_v5 }
 0x198   :  { %v327_v8 = vmul.f32 %v326_v7, %v323_v6 }
 0x1a1   :  { %v469_v62 = vpop.eup %468 }
 0x1a2   :  { %v318_v0 = vsub.f32 0.0, %v469_v62 }
 0x1a4   :  { %v319_v1 = vmul.f32 1.442695, %v318_v0 }
 0x1a6   :  { %470 = vpow2.f32 %v319_v1 }
 0x1b3   :  { %v471_v9 = vpop.eup %470 }
 0x1b4   :  { %v328_v10 = vmul.f32 %v471_v9, %v327_v8 }
 0x1b6   :  { %v330_v11 = vsel %vm329_vm2, %v328_v10, 0.0 }
 0x1b7   :  { %331 = vadd.xlane.f32.xlu0 %v330_v11 }
 0x240   :  { %v332_v12 = vpop.xlane.xlu0 %331 }
 0x241   :  { %v333_v13 = vrot.slane %v332_v12, 4 }
 0x243   :  { %v334_v14 = vadd.f32 %v333_v13, %v332_v12 }
 0x245   :  { %v335_v15 = vrot.slane %v334_v14, 2 }
 0x247   :  { %v336_v16 = vadd.f32 %v335_v15, %v334_v14 }
 0x249   :  { %v337_v17 = vrot.slane %v336_v16, 1 }
 0x24b   :  { %v338_v18 = vadd.f32 %v337_v17, %v336_v16 }
 0x24d   :  { %463 = vpush %v338_v18 }
 0x27e   :  { %s464_s28 = spop %463 }
 0x27f   :  { %v340_v19 = vstv %s464_s28 }
 0x280   :  { %341 = vst [vmem:[#allocation2] sm:$0xff] %v340_v19 }
 0x281   :  { %483 = shalt.err (!%p480_p4)
}
 0x282   :  { %351 = dma.vmem_to_hbm [thread:$0]  %s349_s6, 128, %s732_s9, [#allocation3]  }
 0x283   :  { %492 = dma.done.wait [#allocation3], 128  }
 0x284   :  { %493 = vsyncadd [#allocation3], 4294967168 }
 0x285   :  { %355 = vsyncpa [#allocation3], 1 }

</bundles_post_ra>
